<compile_context>
chip_gen: v6e
topology: v6e:2x2x1
jax: 0.10.0
libtpu: 0.0.40
codegen_flags: <defaults>
</compile_context>

<pallas_src>
import functools

import numpy as np
import jax
import jax.numpy as jnp
from jax.experimental import pallas as pl
from jax.experimental.pallas import tpu as pltpu


_LANE = 128
# (offset, coefficient) bands of the spectral adjacency (excluding the diagonal).
_BANDS = ((1, 1.0), (-1, 1.0),
          (5, 0.5), (-5, 0.5),
          (10, 0.5), (-10, 0.5),
          (20, 0.5), (-20, 0.5))

_TARGET_ROWS = 1024                      # rows/step: amortize step overhead, feed MXU
_VMEM_WORKSET_BUDGET = 32 * 1024 * 1024  # per-step working-set target (fits v7x 64 MiB/TC)
_VMEM_SOFT_CAP = 48 * 1024 * 1024        # never request more scoped VMEM than this (v7x safe)


# ---------------------------------------------------------------------------
# Host-side (cheap, one-time) adjacency metadata — mirrors the PyTorch code.
# ---------------------------------------------------------------------------
def _build_spectral_adjacency_np(seq_len: int) -> np.ndarray:
    adj = np.eye(seq_len, dtype=np.float32)
    for i in range(seq_len - 1):
        adj[i, i + 1] = 1.0
        adj[i + 1, i] = 1.0
    for skip in (5, 10, 20):
        for i in range(seq_len - skip):
            adj[i, i + skip] = 0.5
            adj[i + skip, i] = 0.5
    return adj


def _degree_inv_sqrt_np(seq_len: int) -> np.ndarray:
    adj = _build_spectral_adjacency_np(seq_len)
    row_sum = np.clip(adj.sum(axis=1), 1e-6, None)
    return (row_sum ** -0.5).astype(np.float32)


def _band_coefficients_np(seq_len: int, batch_block: int):
    """Per-row, per-band coefficients c_off[i] = d[i]*coeff*d[i+off]*valid(i,off),
    tiled over one batch block (batch_block sequences). Column 0 = diagonal."""
    d = _degree_inv_sqrt_np(seq_len)
    pos = np.arange(seq_len)
    offsets = [0] + [o for o, _ in _BANDS if abs(o) < seq_len]
    coeffs = [1.0] + [c for o, c in _BANDS if abs(o) < seq_len]
    cols = []
    for off, cf in zip(offsets, coeffs):
        j = pos + off
        valid = (j >= 0) & (j < seq_len)
        col = d * cf * d[np.clip(j, 0, seq_len - 1)] * valid
        cols.append(col.astype(np.float32))
    c_seq = np.stack(cols, axis=1)                                  # (S, n_bands)
    return tuple(offsets), np.tile(c_seq, (batch_block, 1))         # (MB, n_bands)


# ---------------------------------------------------------------------------
# Pallas kernel: fused  (x @ W^T + b)  followed by banded adjacency apply.
# ---------------------------------------------------------------------------
def _graph_conv_kernel(x_ref, w_ref, b_ref, c_ref, o_ref, *, offsets):
    # x_ref: (MB, Fin)      flattened rows of batch_block sequences
    # w_ref: (Fin, Fout_p)  pre-transposed, lane-padded nn.Linear weight
    # b_ref: (1, Fout_p)    lane-padded bias
    # c_ref: (MB, n_bands)  folded D^-1/2 * coeff * D^-1/2 * validity per band
    # o_ref: (MB, Fout_p)
    support = jnp.dot(x_ref[...], w_ref[...],
                      preferred_element_type=jnp.float32) + b_ref[...]
    mb = support.shape[0]

    # Banded adjacency:  acc = sum_off  c_off ⊙ roll(support, -off)
    acc = c_ref[:, 0:1] * support                                   # off = 0 (diagonal)
    for k, off in enumerate(offsets[1:], start=1):
        # XLU sublane rotate: rolled[i] = support[(i + off) mod MB]; wrapped rows
        # are multiplied by a precomputed zero coefficient, so no leakage.
        rolled = pltpu.roll(support, shift=(-off) % mb, axis=0)
        acc = acc + c_ref[:, k:k + 1] * rolled
    o_ref[...] = acc.astype(o_ref.dtype)


# ---------------------------------------------------------------------------
# Wrapper
# ---------------------------------------------------------------------------
def _workset_bytes(batch_block: int, seq_len: int, fin: int, fout_p: int) -> int:
    mb = batch_block * seq_len
    return 4 * (2 * mb * fin            # x block (double-buffered)
                + 2 * mb * fout_p       # out block (double-buffered)
                + 2 * fin * fout_p      # W (grid-invariant, still 2 buffers)
                + 2 * mb * _LANE        # band coefficients (lane-padded)
                + 16 * fout_p           # bias
                + 3 * mb * fout_p)      # in-kernel temporaries (support/acc/rolled)


def _pick_batch_block(batch: int, seq_len: int, fin: int, fout_p: int) -> int:
    """Pick bB | batch such that MB = bB*S rows is sublane-aligned, the working
    set fits the VMEM budget, the grid has >= 2 steps whenever possible (DMA
    overlap + v7x's 2 TCs), an even grid length is preferred, and rows/step is
    pushed toward _TARGET_ROWS."""
    cands = [c for c in range(1, batch + 1)
             if batch % c == 0 and ((c * seq_len) % 8 == 0 or c == batch)]
    wset = lambda c: _workset_bytes(c, seq_len, fin, fout_p)
    fitting = [c for c in cands if wset(c) <= _VMEM_WORKSET_BUDGET]
    if not fitting:
        fitting = [min(cands, key=wset)]
    multi = [c for c in fitting if batch // c >= 2] or fitting       # grid >= 2
    big = [c for c in multi if c * seq_len >= _TARGET_ROWS]
    pool = big or multi
    even = [c for c in pool if (batch // c) % 2 == 0] or pool         # v7x megacore
    return min(even) if big else max(even)


def graph_conv_forward(x, weight, bias):
    """x: [B, S, Fin], weight: [Fout, Fin] (PyTorch nn.Linear layout), bias: [Fout]."""
    B, S, Fin = x.shape
    Fout = weight.shape[0]

    # Lane-dense output: pad Fout up to a multiple of 128 (unmasked full-lane stores).
    Fout_p = ((Fout + _LANE - 1) // _LANE) * _LANE
    if Fout_p != Fout:
        weight = jnp.pad(weight, ((0, Fout_p - Fout), (0, 0)))
        bias = jnp.pad(bias, (0, Fout_p - Fout))
    # One-time host transpose so the MXU sees a natural (M,K) x (K,N) matmul.
    w_t = jnp.transpose(weight).astype(jnp.float32)                  # (Fin, Fout_p)
    b2d = bias.reshape(1, Fout_p).astype(jnp.float32)

    bB = _pick_batch_block(B, S, Fin, Fout_p)
    MB = bB * S
    grid = (B // bB,)

    offsets, c_np = _band_coefficients_np(S, bB)
    c_cols = jnp.asarray(c_np)                                       # (MB, n_bands)
    n_bands = c_cols.shape[1]

    x_flat = x.reshape(B * S, Fin)
    kernel = functools.partial(_graph_conv_kernel, offsets=offsets)

    # Raise scoped VMEM only when the working set needs it; cap for v7x (64 MiB/TC).
    # (For huge Fin*Fout that can't fit even at bB=1 the next step would be an
    #  extra reduction grid axis over Fin — not needed at these sizes.)
    est = _workset_bytes(bB, S, Fin, Fout_p)
    compiler_kwargs = {}
    if est > 8 * 1024 * 1024:
        compiler_kwargs["vmem_limit_bytes"] = int(min(est * 5 // 4, _VMEM_SOFT_CAP))

    out_flat = pl.pallas_call(
        kernel,
        out_shape=jax.ShapeDtypeStruct((B * S, Fout_p), x.dtype),
        grid=grid,
        in_specs=[
            pl.BlockSpec((MB, Fin), lambda i: (i, 0)),               # x rows (tiled)
            pl.BlockSpec((Fin, Fout_p), lambda i: (0, 0)),           # W^T    (grid-invariant)
            pl.BlockSpec((1, Fout_p), lambda i: (0, 0)),             # bias   (grid-invariant)
            pl.BlockSpec((MB, n_bands), lambda i: (0, 0)),           # band coefficients
        ],
        out_specs=pl.BlockSpec((MB, Fout_p), lambda i: (i, 0)),
        compiler_params=pltpu.CompilerParams(
            dimension_semantics=("parallel",), **compiler_kwargs),
    )(x_flat, w_t, b2d, c_cols)

    out = out_flat.reshape(B, S, Fout_p)
    if Fout_p != Fout:
        out = out[..., :Fout]
    return out


# ---------------------------------------------------------------------------
# Demo / self-check
# ---------------------------------------------------------------------------
if __name__ == "__main__":
    B, S, Fin, Fout = 2, 8, 32, 16

    key = jax.random.PRNGKey(0)
    kx, kw, kb = jax.random.split(key, 3)

    # Matches nn.Linear's uniform(-1/sqrt(Fin), 1/sqrt(Fin)) init.
    bound = 1.0 / np.sqrt(Fin)
    weight = jax.random.uniform(kw, (Fout, Fin), jnp.float32, -bound, bound)
    bias = jax.random.uniform(kb, (Fout,), jnp.float32, -bound, bound)
    x = jax.random.normal(kx, (B, S, Fin), dtype=jnp.float32)

    out = jax.block_until_ready(graph_conv_forward(x, weight, bias))
    assert out.shape == (B, S, Fout)

    # Reference: dense adjacency path, exactly as the PyTorch module computes it.
    adj = _build_spectral_adjacency_np(S)
    d = _degree_inv_sqrt_np(S)
    adj_norm = jnp.asarray((d[:, None] * adj) * d[None, :])
    support_ref = jnp.einsum("bsf,of->bso", x, weight,
                             precision=jax.lax.Precision.HIGHEST) + bias
    ref = jnp.einsum("st,bto->bso", adj_norm, support_ref,
                     precision=jax.lax.Precision.HIGHEST)
    np.testing.assert_allclose(np.asarray(out), np.asarray(ref),
                               rtol=1e-4, atol=1e-5)

    print("KERNEL_OK")
</pallas_src>

<mosaic_0001>
module attributes {stable_mosaic.version = 11 : i64} {
  func.func @_graph_conv_kernel(%arg0: i32, %arg1: memref<8x32xf32, #tpu.memory_space<vmem>>, %arg2: memref<32x128xf32, #tpu.memory_space<vmem>>, %arg3: memref<1x128xf32, #tpu.memory_space<vmem>>, %arg4: memref<8x5xf32, #tpu.memory_space<vmem>>, %arg5: memref<8x128xf32, #tpu.memory_space<vmem>>) attributes {dimension_semantics = [#tpu.dimension_semantics<parallel>], iteration_bounds = array<i64: 2>, scalar_prefetch = 0 : i64, scratch_operands = 0 : i64, tpu.core_type = #tpu.core_type<tc>, window_params = [{transform_indices = @transform_0, window_bounds = array<i64: 8, 32>}, {pipeline_mode = #tpu.pipeline_mode<synchronous>, transform_indices = @transform_1, window_bounds = array<i64: 32, 128>}, {pipeline_mode = #tpu.pipeline_mode<synchronous>, transform_indices = @transform_2, window_bounds = array<i64: 1, 128>}, {pipeline_mode = #tpu.pipeline_mode<synchronous>, transform_indices = @transform_3, window_bounds = array<i64: 8, 5>}, {transform_indices = @transform_4, window_bounds = array<i64: 8, 128>}]} {
    %c0 = arith.constant 0 : index
    %c0_0 = arith.constant 0 : index
    %0 = vector.load %arg1[%c0, %c0_0] : memref<8x32xf32, #tpu.memory_space<vmem>>, vector<8x32xf32>
    %c0_1 = arith.constant 0 : index
    %c0_2 = arith.constant 0 : index
    %1 = vector.load %arg2[%c0_1, %c0_2] : memref<32x128xf32, #tpu.memory_space<vmem>>, vector<32x128xf32>
    %cst = arith.constant dense<0.000000e+00> : vector<8x128xf32>
    %2 = tpu.matmul %0, %1, %cst {dimension_numbers = #tpu.dot_dimension_numbers<[1], [0], [0], [1], [0, 0, 1, 1], [], []>} : vector<8x32xf32>, vector<32x128xf32>, vector<8x128xf32> -> vector<8x128xf32>
    %c0_3 = arith.constant 0 : index
    %c0_4 = arith.constant 0 : index
    %3 = vector.load %arg3[%c0_3, %c0_4] : memref<1x128xf32, #tpu.memory_space<vmem>>, vector<1x128xf32>
    %4 = vector.broadcast %3 : vector<1x128xf32> to vector<8x128xf32>
    %5 = arith.addf %2, %4 : vector<8x128xf32>
    %c0_5 = arith.constant 0 : index
    %c0_6 = arith.constant 0 : index
    %6 = vector.load %arg4[%c0_5, %c0_6] : memref<8x5xf32, #tpu.memory_space<vmem>>, vector<8x1xf32>
    %7 = vector.broadcast %6 : vector<8x1xf32> to vector<8x128xf32>
    %8 = arith.mulf %7, %5 : vector<8x128xf32>
    %c7_i32 = arith.constant 7 : i32
    %9 = tpu.dynamic_rotate %5 by %c7_i32 dim 0 : vector<8x128xf32>, i32 -> vector<8x128xf32>
    %c0_7 = arith.constant 0 : index
    %c1 = arith.constant 1 : index
    %10 = vector.load %arg4[%c0_7, %c1] : memref<8x5xf32, #tpu.memory_space<vmem>>, vector<8x1xf32>
    %11 = vector.broadcast %10 : vector<8x1xf32> to vector<8x128xf32>
    %12 = arith.mulf %11, %9 : vector<8x128xf32>
    %13 = arith.addf %8, %12 : vector<8x128xf32>
    %c1_i32 = arith.constant 1 : i32
    %14 = tpu.dynamic_rotate %5 by %c1_i32 dim 0 : vector<8x128xf32>, i32 -> vector<8x128xf32>
    %c0_8 = arith.constant 0 : index
    %c2 = arith.constant 2 : index
    %15 = vector.load %arg4[%c0_8, %c2] : memref<8x5xf32, #tpu.memory_space<vmem>>, vector<8x1xf32>
    %16 = vector.broadcast %15 : vector<8x1xf32> to vector<8x128xf32>
    %17 = arith.mulf %16, %14 : vector<8x128xf32>
    %18 = arith.addf %13, %17 : vector<8x128xf32>
    %c3_i32 = arith.constant 3 : i32
    %19 = tpu.dynamic_rotate %5 by %c3_i32 dim 0 : vector<8x128xf32>, i32 -> vector<8x128xf32>
    %c0_9 = arith.constant 0 : index
    %c3 = arith.constant 3 : index
    %20 = vector.load %arg4[%c0_9, %c3] : memref<8x5xf32, #tpu.memory_space<vmem>>, vector<8x1xf32>
    %21 = vector.broadcast %20 : vector<8x1xf32> to vector<8x128xf32>
    %22 = arith.mulf %21, %19 : vector<8x128xf32>
    %23 = arith.addf %18, %22 : vector<8x128xf32>
    %c5_i32 = arith.constant 5 : i32
    %24 = tpu.dynamic_rotate %5 by %c5_i32 dim 0 : vector<8x128xf32>, i32 -> vector<8x128xf32>
    %c0_10 = arith.constant 0 : index
    %c4 = arith.constant 4 : index
    %25 = vector.load %arg4[%c0_10, %c4] : memref<8x5xf32, #tpu.memory_space<vmem>>, vector<8x1xf32>
    %26 = vector.broadcast %25 : vector<8x1xf32> to vector<8x128xf32>
    %27 = arith.mulf %26, %24 : vector<8x128xf32>
    %28 = arith.addf %23, %27 : vector<8x128xf32>
    %c0_11 = arith.constant 0 : index
    %c0_12 = arith.constant 0 : index
    %29 = vector.load %arg5[%c0_11, %c0_12] : memref<8x128xf32, #tpu.memory_space<vmem>>, vector<8x128xf32>
    tpu.vector_store %arg5[%c0_11, %c0_12], %28 {strides = array<i32>} : memref<8x128xf32, #tpu.memory_space<vmem>>, vector<8x128xf32>,
    return
  }
  func.func @transform_0(%arg0: i32) -> (i32, i32) {
    %c0_i32 = arith.constant 0 : i32
    %c0_i32_0 = arith.constant 0 : i32
    return %arg0, %c0_i32 : i32, i32
  }
  func.func @transform_1(%arg0: i32) -> (i32, i32) {
    %c0_i32 = arith.constant 0 : i32
    %c0_i32_0 = arith.constant 0 : i32
    %c0_i32_1 = arith.constant 0 : i32
    return %c0_i32, %c0_i32_0 : i32, i32
  }
  func.func @transform_2(%arg0: i32) -> (i32, i32) {
    %c0_i32 = arith.constant 0 : i32
    %c0_i32_0 = arith.constant 0 : i32
    %c0_i32_1 = arith.constant 0 : i32
    return %c0_i32, %c0_i32_0 : i32, i32
  }
  func.func @transform_3(%arg0: i32) -> (i32, i32) {
    %c0_i32 = arith.constant 0 : i32
    %c0_i32_0 = arith.constant 0 : i32
    %c0_i32_1 = arith.constant 0 : i32
    return %c0_i32, %c0_i32_0 : i32, i32
  }
  func.func @transform_4(%arg0: i32) -> (i32, i32) {
    %c0_i32 = arith.constant 0 : i32
    %c0_i32_0 = arith.constant 0 : i32
    return %arg0, %c0_i32 : i32, i32
  }
}

</mosaic_0001>

<bundles_post_ra>
// kernel: tpu_custom_call.1
= control target key start
LH: loop header
LB: loop body
LE: loop exit
PB: predicated region body
PF: predicated region fallthrough
CT: control target
= control target key end

     0   :  { %9 = vsyncpa [#allocation3], 0  ;;  %s941_s0 = inlined_call_operand.hbm [shape: f32[16,32], index: 0, kind: input, shape index: {}]   ;;  %s942_s1 = inlined_call_operand.hbm [shape: f32[32,128], index: 1, kind: input, shape index: {}]   ;;  %s943_s2 = inlined_call_operand.vmem [shape: f32[1,128], index: 2, kind: input, shape index: {}]   ;;  %s944_s3 = inlined_call_operand.hbm [shape: f32[8,5], index: 3, kind: input, shape index: {}]   ;;  %s945_s4 = inlined_call_operand.hbm [shape: f32[16,128], index: 4, kind: output, shape index: {}]  }
   0x1   :  { %11 = vsyncpa [#allocation3 + $0x1], 0 }
   0x2   :  { %12 = vsyncpa [#allocation6], 0 }
   0x3   :  { %13 = vsyncpa [#allocation4], 0 }
   0x4   :  { %15 = vsyncpa [#allocation4 + $0x1], 0  ;;  %s769_s15 = smov 0   ;;  %s771_s16 = smov 0  }
   0x5   :  { %s773_s17 = smov 0   ;;  %s775_s18 = smov 0  }
   0x6 LB: > { %s790_s19 = sadd.s32 4294967295, %s729_s18   ;;  %s465_s20 = sadd.s32 4294967294, %s729_s18   ;;  %s729_s18 = sphi %s775_s18, %s967_s18   ;;  %s725_s17 = sphi %s773_s17, %s966_s17   ;;  %s721_s16 = sphi %s771_s16, %s965_s16   ;;  %s717_s15 = sphi %s769_s15, %s964_s15  }
   0x7   : > { %p41_p0 = scmp.ne.s32.totalorder %s721_s16, %s717_s15  ;;  %p946_p1 = scmp.eq.s32.totalorder %s790_s19, 0 }
   0x8   : > { %p134_p3 = scmp.eq.s32.totalorder %s465_s20, 1  ;;  %p466_p5 = scmp.ge.s32.totalorder %s729_s18, 1 }
   0x9   : > { %p799_p4 = por %p946_p1, %p41_p0  ;;  %p141_p7 = scmp.lt.s32.totalorder %s729_s18, 3 }
   0xa   : > { %p804_p6 = por %p134_p3, %p41_p0  ;;  %s731_s24 = smov [#allocation5]  }
   0xb   : > { %s950_s21 = scalar_select %p799_p4, 1, 0 }
   0xc   : > { %s951_s22 = scalar_select %p804_p6, 1, 0 }
   0xd   : > { %p809_p8 = pnand %p466_p5, %p141_p7  ;;  %s153_s25 = sshll.u32 %s731_s24, 4  ;;  %s154_s25 = int_to_ptr.vmem [resolvable:$true] %s153_s25 }
   0xe   : > { %s732_s27 = smov [#allocation7]   ;;  %s592_s29 = scalar_lea.vmem %s154_s25, 512 }
   0xf   : > { %s952_s23 = scalar_select %p809_p8, 1, 0 }
  0x10   : > { %p511_p9 = pneg %p809_p8  ;;  %s170_s28 = sshll.u32 %s732_s27, 4  ;;  %s171_s28 = int_to_ptr.vmem [resolvable:$true] %s170_s28 }
  0x11   : > { %p593_p13 = scmp.ne.s32.totalorder %s154_s25, %s592_s29  ;;  %p600_p5 = scmp.lt.s32.totalorder %s154_s25, %s154_s25 }
  0x12   : > { %p818_p11 = pnand %p511_p9, %p946_p1  ;;  %p601_p7 = scmp.lt.s32.totalorder %s592_s29, %s592_s29 }
  0x14   : > { %p583_p12 = pneg %p818_p11  ;;  %p602_p10 = por %p601_p7, %p600_p5 }
  0x16   : > { %p595_p0 = pnand %p593_p13, %p583_p12 }
  0x18   : > { %p596_p3 = pneg %p595_p0 }
  0x1a   : > { %p603_p9 = pnand %p602_p10, %p596_p3 }
  0x1c   : > { %606 = shalt.err (!%p603_p9)
}
  0x1d   : > { %s733_s30 = smov 128   ;;  %s734_s5 = smov 8  }
  0x1e   : > { %514 = dma.hbm_to_vmem [thread:$0]  (!%p818_p11), %s942_s1, 512, %s154_s25, [#allocation6], %s733_s30, %s733_s30, %s734_s5  }
  0x1f   : > { %s618_s8 = scalar_lea.vmem %s171_s28, 128  ;;  %p626_p2 = scmp.lt.s32.totalorder %s171_s28, %s171_s28 }
  0x20   : > { %p619_p1 = scmp.ne.s32.totalorder %s171_s28, %s618_s8  ;;  %p627_p6 = scmp.lt.s32.totalorder %s618_s8, %s618_s8 }
  0x22   : > { %p621_p13 = pnand %p619_p1, %p583_p12  ;;  %p628_p5 = por %p627_p6, %p626_p2 }
  0x24   : > { %p622_p0 = pneg %p621_p13 }
  0x26   : > { %p629_p10 = pnand %p628_p5, %p622_p0 }
  0x28   : > { %632 = shalt.err (!%p629_p10)
}
  0x29   : > { %517 = dma.hbm_to_vmem [thread:$0]  (!%p818_p11), %s944_s3, 128, %s171_s28, [#allocation6]  }
  0x2a   : > { %s841_s11 = sadd.s32 1, %s729_s18   ;;  %s28_s12 = sadd.s32 1, %s725_s17 }
  0x2b   : > { %s25_s13 = ssub.s32 %s729_s18, %s841_s11  ;;  %p35_p1 = scmp.ne.s32.totalorder %s725_s17, %s721_s16 }
  0x2c   : > { %p26_p2 = scmp.eq.s32.totalorder %s25_s13, 0  ;;  %p36_p6 = scmp.eq.s32.totalorder %s729_s18, 0 }
  0x2d   : > { %p954_p12 = scmp.eq.s32.totalorder %s790_s19, 1  ;;  %p528_p7 = scmp.lt.s32.totalorder %s729_s18, 2 }
  0x2e   : > { %s857_s20 = scalar_select %p26_p2, %s725_s17, %s28_s12  }
  0x2f   : > { %p851_p3 = por %p954_p12, %p35_p1  ;;  %p37_p9 = por %p36_p6, %p35_p1 }
  0x30   : > { %s181_s24 = sand.u32 1, %s725_s17   ;;  %s471_s26 = sshll.u32 %s729_s18, 7 }
  0x31   : > { %s955_s14 = scalar_select %p851_p3, 1, 0 }
  0x32   : > { %s470_s25 = sshll.u32 %s181_s24, 3  ;;  %s864_s29 = scalar_lea.hbm %s941_s0, %s471_s26 }
  0x33   : > { %s185_s30 = scalar_lea.vmem [#allocation2], %s470_s25  ;;  %p866_p11 = pnand %p528_p7, %p37_p9 }
  0x34   : > { %s192_s5 = sshll.u32 %s185_s30, 4  ;;  %s182_s7 = scalar_lea.sflag [#allocation3], %s181_s24  ;;  %s193_s5 = int_to_ptr.vmem [resolvable:$true] %s192_s5 }
  0x35   : > { %s633_s8 = scalar_lea.hbm %s864_s29, 128  ;;  %p635_p0 = pneg %p866_p11 }
  0x36   : > { %p634_p13 = scmp.ne.s32.totalorder %s864_s29, %s633_s8  ;;  %s638_s12 = scalar_lea.hbm %s941_s0, 256 }
  0x37   : > { %p639_p1 = scmp.lt.s32.totalorder %s864_s29, %s941_s0  ;;  %p640_p2 = scmp.lt.s32.totalorder %s638_s12, %s633_s8 }
  0x38   : > { %p636_p5 = pnand %p635_p0, %p634_p13 }
  0x39   : > { %p641_p6 = por %p640_p2, %p639_p1 }
  0x3a   : > { %p637_p10 = pneg %p636_p5 }
  0x3c   : > { %p642_p12 = pnand %p641_p6, %p637_p10 }
  0x3e   : > { %645 = shalt.err (!%p642_p12)
}
  0x3f   : > { %s646_s26 = scalar_lea.vmem %s193_s5, 128  ;;  %s735_s24 = smov [#allocation2]  }
  0x40   : > { %p647_p7 = scmp.ne.s32.totalorder %s193_s5, %s646_s26  ;;  %s651_s27 = sshll.u32 %s735_s24, 4  ;;  %s652_s27 = int_to_ptr.vmem [resolvable:$false] %s651_s27 }
  0x41   : > { %s653_s28 = scalar_lea.vmem %s652_s27, 256  ;;  %p654_p13 = scmp.lt.s32.totalorder %s193_s5, %s652_s27 }
  0x42   : > { %p649_p9 = pnand %p647_p7, %p635_p0  ;;  %p655_p5 = scmp.lt.s32.totalorder %s653_s28, %s646_s26 }
  0x44   : > { %p650_p3 = pneg %p649_p9  ;;  %p656_p4 = por %p655_p5, %p654_p13 }
  0x46   : > { %p657_p8 = pnand %p656_p4, %p650_p3 }
  0x48   : > { %660 = shalt.err (!%p657_p8)
}
  0x49   : > { %521 = dma.hbm_to_vmem [thread:$0]  (!%p866_p11), %s864_s29, 128, %s193_s5, %s182_s7  }
  0x4a   : > { %p957_p10 = scmp.ne.s32.totalorder %s952_s23, 0 }
  0x4b   : > { %s887_s30 = sand.u32 (!%p957_p10), 1, %s721_s16   ;;  %p958_p4 = scmp.ne.s32.totalorder (!%p957_p10), %s950_s21, 0 }
  0x4c   : > { %201 = sbr.rel (%p957_p10) target bundleno = 315 (0x13b), region = 36  ;;  %s473_s8 = sshll.u32 (!%p957_p10), %s887_s30, 3 }
  0x4d   : > { %s204_s9 = scalar_lea.sflag (!%p957_p10), [#allocation3], %s887_s30  ;;  %s207_s10 = scalar_lea.vmem (!%p957_p10), [#allocation2], %s473_s8 }
  0x51   : > { %704 = dma.done.wait (%p958_p4), %s204_s9, 128  }
  0x52   : > { %706 = vsyncadd (%p958_p4), %s204_s9, 4294967168  ;;  %p959_p8 = scmp.eq.s32.totalorder %s790_s19, 0 }
  0x54   : > { %708 = dma.done.wait (%p959_p8), [#allocation6], 640   ;;  %p960_p3 = pmov %p959_p8 }
  0x55   : > { %v736_v0 = vmov 0.0   ;;  %vm737_vm0 = vmmov 0   ;;  %v738_v1 = vmov 2   ;;  %v739_v2 = vmov 0   ;;  %v244_v3 = vld [vmem:[#allocation5 + $0x18] sm:$0xff]  ;;  %v243_v4 = vld [vmem:[#allocation5 + $0x10] sm:$0xff] }
  0x56   : > { %710 = vsyncadd (%p960_p3), [#allocation6], 4294966656  ;;  %488 = vmatprep.subr.mxu0 %v736_v0  ;;  %496 = vmatprep.mubr.msk.f32.mxu0 %vm737_vm0, %v736_v0  ;;  %v326_v5 = vld [vmem:[#allocation7] sm:$0xff]  ;;  %v242_v6 = vld [vmem:[#allocation5 + $0x8] sm:$0xff]  ;;  %vm252_vm1 = vcmask 261120   ;;  %v740_v9 = vmov 3  }
  0x57   : > { %577 = vset.pattern.permute.xlu1 %v738_v1  ;;  %575 = vset.pattern.permute.xlu0 %v739_v2  ;;  %v241_v7 = vld [vmem:[#allocation5] sm:$0xff]  ;;  %v240_v8 = vld [vmem:[%s207_s10] sm:$0xff]  ;;  %v741_v10 = vmov 1   ;;  %v742_v11 = vmov 4   ;;  %s480_s29 = sshll.u32 %s790_s19, 7  ;;  %s239_s5 = scalar_lea.vmem [#allocation8], %s473_s8 }
  0x58   : > { %489 = vmatpush3.msra.mxu0 %v244_v3  ;;  %342 = vperm.xlu1 %577, %v326_v5   ;;  %v477_v14 = vld [vmem:[%s943_s2] ss:$0 sm:$0xff]  ;;  %s376_s6 = sshll.u32 %s239_s5, 4  ;;  %s374_s13 = scalar_lea.hbm %s945_s4, %s480_s29  ;;  %s377_s6 = int_to_ptr.vmem [resolvable:$true] %s376_s6 }
  0x59   : > { %490 = vmatprep.subr.mxu0 %v736_v0  ;;  %329 = vperm.xlu0 %575, %v326_v5   ;;  %s363_s25 = scalar_lea.sflag [#allocation4], %s887_s30  ;;  %s661_s26 = scalar_lea.vmem %s377_s6, 128 }
  0x5a   : > { %491 = vmatpush3.msra.mxu0 %v243_v4  ;;  %p662_p11 = scmp.ne.s32.totalorder %s377_s6, %s661_s26  ;;  %p961_p0 = scmp.ne.s32.totalorder %s955_s14, 0 }
  0x5b   : > { %492 = vmatprep.subr.mxu0 %v736_v0  ;;  %s743_s24 = smov [#allocation8]  }
  0x5c   : > { %493 = vmatpush3.msra.mxu0 %v242_v6  ;;  %578 = vset.pattern.permute.xlu1 %v740_v9  ;;  %p663_p1 = pnand %p662_p11, %p961_p0  ;;  %s665_s19 = sshll.u32 %s743_s24, 4  ;;  %s666_s19 = int_to_ptr.vmem [resolvable:$false] %s665_s19 }
  0x5d   : > { %494 = vmatprep.subr.mxu0 %v736_v0  ;;  %349 = vperm.xlu1 %578, %v326_v5   ;;  %s667_s27 = scalar_lea.vmem %s666_s19, 256  ;;  %p668_p6 = scmp.lt.s32.totalorder %s377_s6, %s666_s19 }
  0x5e   : > { %495 = vmatpush3.msra.mxu0 %v241_v7  ;;  %576 = vset.pattern.permute.xlu0 %v741_v10  ;;  %p664_p2 = pneg %p663_p1  ;;  %p669_p12 = scmp.lt.s32.totalorder %s667_s27, %s661_s26 }
  0x5f   : > { %497 = vmatmul.mubr.msk.f32.vlgmr.msra.gmra.mxu0 %vm252_vm1, %v240_v8  ;;  %335 = vperm.xlu0 %576, %v326_v5  }
  0x60   : > { %p670_p7 = por %p669_p12, %p668_p6 }
  0x61   : > { %579 = vset.pattern.permute.xlu1 %v742_v11 }
  0x62   : > { %356 = vperm.xlu1 %579, %v326_v5   ;;  %p671_p9 = pnand %p670_p7, %p664_p2 }
  0x63   : > { %580 = vset.pattern.permute.xlu0 %v742_v11 }
  0xd3   : > { %v343_v12 = vpop.permute.xlu1 %342 }
  0xd4   : > { %v330_v13 = vpop.permute.xlu0 %329 }
  0xd8   : > { %v350_v16 = vpop.permute.xlu1 %349 }
  0xda   : > { %v336_v19 = vpop.permute.xlu0 %335 }
  0xdd   : > { %v357_v28 = vpop.permute.xlu1 %356 }
 0x11f   : > { %v322_v15 = vpop.f32.mrf.mxu0 }
 0x120   : > { %v323_v17 = vadd.f32 %v477_v14, %v322_v15 }
 0x121   : > { %v498_v18 = vpop.f32.mrf.mxu0 }
 0x122   : > { %v333_v20 = vrot.slane %v323_v17, 1  ;;  %v340_v21 = vrot.slane %v323_v17, 7  ;;  %v332_v22 = vmul.f32 %v330_v13, %v323_v17  ;;  %v347_v24 = vrot.slane %v323_v17, 5 }
 0x123   : > { %v354_v25 = vrot.slane %v323_v17, 3 }
 0x124   : > { %v338_v23 = vmul.f32 %v336_v19, %v333_v20  ;;  %v345_v27 = vmul.f32 %v343_v12, %v340_v21  ;;  %v352_v30 = vmul.f32 %v350_v16, %v347_v24 }
 0x125   : > { %v359_v31 = vmul.f32 %v357_v28, %v354_v25 }
 0x126   : > { %v339_v26 = vadd.f32 %v338_v23, %v332_v22 }
 0x128   : > { %v346_v29 = vadd.f32 %v345_v27, %v339_v26 }
 0x12a   : > { %v353_v32 = vadd.f32 %v352_v30, %v346_v29 }
 0x12c   : > { %v360_v33 = vadd.f32 %v359_v31, %v353_v32 }
 0x12e   : > { %361 = vst [vmem:[%s239_s5] sm:$0xff] %v360_v33 }
 0x12f   : > { %674 = shalt.err (!%p671_p9)
}
 0x130   : > { %s675_s28 = scalar_lea.hbm %s374_s13, 128  ;;  %s679_s9 = scalar_lea.hbm %s945_s4, 256 }
 0x131   : > { %p676_p13 = scmp.ne.s32.totalorder %s374_s13, %s675_s28  ;;  %p680_p4 = scmp.lt.s32.totalorder %s374_s13, %s945_s4 }
 0x132   : > { %p681_p8 = scmp.lt.s32.totalorder %s679_s9, %s675_s28 }
 0x133   : > { %p677_p5 = pnand %p676_p13, %p961_p0 }
 0x134   : > { %p682_p3 = por %p681_p8, %p680_p4 }
 0x135   : > { %p678_p10 = pneg %p677_p5 }
 0x137   : > { %p683_p11 = pnand %p682_p3, %p678_p10 }
 0x139   : > { %686 = shalt.err (!%p683_p11)
}
 0x13a   : > { %509 = dma.vmem_to_hbm [thread:$0]  (%p961_p0), %s377_s6, 128, %s374_s13, %s363_s25  }
 0x13b PF: > { %s388_s23 = sand.u32 1, %s717_s15   ;;  %p962_p1 = scmp.ne.s32.totalorder %s951_s22, 0 }
 0x13c   : > { %p963_p2 = scmp.ge.s32.totalorder %s729_s18, 2  ;;  %s389_s29 = scalar_lea.sflag [#allocation4], %s388_s23 }
 0x13e   : > { %p523_p6 = pnand %p963_p2, %p962_p1 }
 0x140   : > { %p524_p12 = pneg %p523_p6 }
 0x142   : > { %712 = dma.done.wait (%p524_p12), %s389_s29, 128  }
 0x143   : > { %714 = vsyncadd (%p524_p12), %s389_s29, 4294967168  ;;  %p18_p7 = scmp.ge.s32.totalorder %s841_s11, 4   ;;  %s964_s15 = smov %s721_s16 }
 0x144   : > { %s965_s16 = smov %s725_s17  ;;  %s966_s17 = smov %s857_s20 }
 0x145   : > { %s967_s18 = smov %s841_s11  ;;  %20 = sbr.rel (!%p18_p7) target bundleno = 6 (0x6), region = 89 }
 0x14a   :  { %394 = vsyncpa [#allocation3], 1 }
 0x14b   :  { %396 = vsyncpa [#allocation3 + $0x1], 1 }
 0x14c   :  { %397 = vsyncpa [#allocation6], 1 }
 0x14d   :  { %398 = vsyncpa [#allocation4], 1 }
 0x14e   :  { %400 = vsyncpa [#allocation4 + $0x1], 1 }

</bundles_post_ra>
